<compile_context>
chip_gen: v7x
topology: tpu7x:2x2x1
jax: 0.10.0
libtpu: 0.0.40
codegen_flags: <defaults>
</compile_context>

<pallas_src>
import functools

import jax
import jax.numpy as jnp
from jax import lax
from jax.experimental import pallas as pl
from jax.experimental.pallas import tpu as pltpu

_BIG = 1e30  # pushes excluded columns out of the hardest-negative min


def _round_up(x, m):
    return (x + m - 1) // m * m


def _tpu_hw_info():
    """(vmem_capacity_bytes, device_kind lowercase) with safe fallbacks."""
    vmem = 128 << 20
    kind = ""
    try:
        vmem = int(pltpu.get_tpu_info().vmem_capacity_bytes)
    except Exception:
        pass
    try:
        kind = jax.devices()[0].device_kind.lower()
    except Exception:
        pass
    return vmem, kind


def _pick_row_tile(n, vmem_cap, kind):
    n8 = _round_up(max(int(n), 1), 8)
    small_vmem = vmem_cap < (96 << 20)  # v7x: 64 MiB per TensorCore
    # v5e: 4x128x128 MXU + tight scoped-VMEM defaults -> prefer 128-row tiles.
    tm_target = 128 if (small_vmem or "v5" in kind or "v7" in kind) else 256
    return n8 if n8 <= tm_target else tm_target


def _pick_col_chunk(n_pad, tm):
    if n_pad <= 512:
        return n_pad
    for cand in (512, 256, 128, tm):
        if n_pad % cand == 0:
            return cand
    return tm  # tm always divides n_pad


def _triplet_loss_kernel(emb_ref, sq_a_ref, lab_a_ref, sq_c_ref, lab_c_ref,
                         out_ref, *, tm, tn, n_chunks, n_real, n_pad, lane_out):
    g = pl.program_id(0)

    # Anchor rows sliced from the single resident embedding operand
    # (tm is a multiple of 8 -> sublane-aligned; no second HBM stream).
    if tm == n_pad:
        a = emb_ref[...]                                          # (tm, D)
    else:
        a = emb_ref[pl.ds(pl.multiple_of(g * tm, tm), tm), :]     # (tm, D)

    sq_a = sq_a_ref[...]                                          # (tm, 1) f32
    lab_a = lab_a_ref[...]                                        # (tm, 1) i32

    # Hoisted broadcasts (constant across column chunks).
    row_idx = lax.broadcasted_iota(jnp.int32, (tm, tn), 0) + g * tm
    col_iota = lax.broadcasted_iota(jnp.int32, (tm, tn), 1)
    mask_pad = n_real < n_pad                                      # static

    def chunk(j, carry):
        pos_max, neg_min, val_max = carry
        if isinstance(j, int):                  # static single-chunk path
            c0 = j * tn
        else:
            c0 = pl.multiple_of(j * tn, tn)
        b = emb_ref[pl.ds(c0, tn), :]                             # (tn, D)

        # (tm, tn) pairwise dot on the MXU, contracting the feature dims of
        # both operands directly (no materialized transpose), f32 accumulate.
        dot = lax.dot_general(a, b, (((1,), (1,)), ((), ())),
                              preferred_element_type=jnp.float32)

        sq_c = sq_c_ref[j, :].reshape(1, tn)                      # (1, tn) f32
        lab_c = lab_c_ref[j, :].reshape(1, tn)                    # (1, tn) i32
        d2 = jnp.maximum(sq_a - 2.0 * dot + sq_c, 0.0)            # squared dist

        col_idx = col_iota + j * tn
        eq = lab_a == lab_c                                       # (tm, tn)
        not_diag = row_idx != col_idx
        if mask_pad:
            valid = col_idx < n_real
            pos_mask = eq & not_diag & valid
            neg_excl = eq | jnp.logical_not(valid)
            d2_valid = jnp.where(valid, d2, 0.0)
        else:
            pos_mask = eq & not_diag
            neg_excl = eq
            d2_valid = d2

        # Batch-hard mining in squared space (argmax/argmin unchanged).
        pos_max = jnp.maximum(
            pos_max,
            jnp.max(jnp.where(pos_mask, d2, 0.0), axis=1, keepdims=True))
        neg_min = jnp.minimum(
            neg_min,
            jnp.min(jnp.where(neg_excl, _BIG, d2), axis=1, keepdims=True))
        val_max = jnp.maximum(
            val_max, jnp.max(d2_valid, axis=1, keepdims=True))
        return pos_max, neg_min, val_max

    init = (jnp.zeros((tm, 1), jnp.float32),
            jnp.full((tm, 1), _BIG, jnp.float32),
            jnp.zeros((tm, 1), jnp.float32))
    if n_chunks == 1:
        pos_max, neg_min, val_max = chunk(0, init)
    else:
        pos_max, neg_min, val_max = lax.fori_loop(0, n_chunks, chunk, init)

    # Only two sqrts per anchor row instead of a (tm, tn) EUP stream.
    hardest_pos = jnp.sqrt(pos_max)
    # Rows with >= 1 valid negative take min-over-negatives; the degenerate
    # all-same-label row falls back to the row max distance, exactly matching
    # the PyTorch `dist + row_max * (1 - mask_an)` formulation.
    hardest_neg = jnp.sqrt(jnp.where(neg_min < 0.5 * _BIG, neg_min, val_max))

    # Numerically stable softplus(hp - hn).
    m = hardest_pos - hardest_neg
    tl = jnp.maximum(m, 0.0) + jnp.log1p(jnp.exp(-jnp.abs(m)))    # (tm, 1)

    if lane_out:
        out_ref[...] = jnp.transpose(tl)        # lane-dense (1, tm) store
    else:
        out_ref[...] = tl                       # (tm, 1)


def _invoke(emb_p, sq_anchor, lab_anchor, sq_cols, lab_cols, *, tm, tn,
            n_real, n_pad, vmem_limit, lane_out, single_buffer):
    n_chunks = n_pad // tn
    grid_m = n_pad // tm
    d = emb_p.shape[1]

    if single_buffer:
        def resident(shape):
            # Constant index_map -> DMA'd once; single buffer halves its VMEM.
            return pl.BlockSpec(shape, lambda g: (0, 0),
                                pipeline_mode=pl.Buffered(1))
    else:
        def resident(shape):
            return pl.BlockSpec(shape, lambda g: (0, 0))

    if lane_out:
        out_shape = jax.ShapeDtypeStruct((1, n_pad), jnp.float32)
        out_spec = pl.BlockSpec((1, tm), lambda g: (0, g))
    else:
        out_shape = jax.ShapeDtypeStruct((n_pad, 1), jnp.float32)
        out_spec = pl.BlockSpec((tm, 1), lambda g: (g, 0))

    kernel = functools.partial(_triplet_loss_kernel, tm=tm, tn=tn,
                               n_chunks=n_chunks, n_real=n_real, n_pad=n_pad,
                               lane_out=lane_out)
    return pl.pallas_call(
        kernel,
        out_shape=out_shape,
        grid=(grid_m,),
        in_specs=[
            resident((n_pad, d)),                       # embeddings (resident)
            pl.BlockSpec((tm, 1), lambda g: (g, 0)),    # anchor squared norms
            pl.BlockSpec((tm, 1), lambda g: (g, 0)),    # anchor labels
            resident((n_chunks, tn)),                   # column squared norms
            resident((n_chunks, tn)),                   # column labels
        ],
        out_specs=out_spec,
        compiler_params=pltpu.CompilerParams(
            dimension_semantics=("parallel",),
            vmem_limit_bytes=vmem_limit),
    )(emb_p, sq_anchor, lab_anchor, sq_cols, lab_cols)


def batch_hard_soft_margin_triplet_loss(embeddings, labels, *,
                                        block_rows=None, block_cols=None,
                                        use_bf16_matmul=False):
    n, d = embeddings.shape
    vmem_cap, kind = _tpu_hw_info()

    tm = _pick_row_tile(n, vmem_cap, kind)
    if block_rows is not None:
        tm = min(_round_up(int(block_rows), 8), _round_up(n, 8))
    n_pad = _round_up(n, tm)
    tn = _pick_col_chunk(n_pad, tm)
    if block_cols is not None and n_pad % int(block_cols) == 0:
        tn = int(block_cols)

    # Lane-dense output needs (1, tm) blocks to satisfy the lane-tiling rule.
    lane_out = (tm == n_pad) or (tm % 128 == 0)

    # Exact f32 squared norms (kept f32 even if the MXU operand is bf16).
    x32 = embeddings.astype(jnp.float32)
    sq = jnp.sum(x32 * x32, axis=-1)

    emb_mxu = embeddings
    if use_bf16_matmul and embeddings.dtype == jnp.float32:
        emb_mxu = embeddings.astype(jnp.bfloat16)   # opt-in: perturbs numerics

    pad_n = n_pad - n
    emb_p = jnp.pad(emb_mxu, ((0, pad_n), (0, 0)))  # D never padded
    sq_p = jnp.pad(sq, (0, pad_n))
    lab_p = jnp.pad(labels.astype(jnp.int32), (0, pad_n))

    n_chunks = n_pad // tn
    sq_anchor = sq_p.reshape(n_pad, 1)
    lab_anchor = lab_p.reshape(n_pad, 1)
    sq_cols = sq_p.reshape(n_chunks, tn)
    lab_cols = lab_p.reshape(n_chunks, tn)

    # VMEM accounting: resident operands single-buffered, small per-block
    # operands double-buffered, chunk-body f32 intermediates, + scratch slack.
    esz = emb_p.dtype.itemsize
    est = (n_pad * d * esz                    # resident embeddings (1 buffer)
           + n_pad * 8                        # column norm + label tables
           + 4 * tm * 128 * 4                 # (tm,1) anchor blocks, 2x dbl-buf
           + 9 * tm * tn * 4                  # live (tm, tn) f32 slabs
           + (tm + tn) * max(d, 128) * esz    # a / b row slices
           + 4 * max(tm, 128) * 4             # output blocks
           + (2 << 20))                       # Mosaic internal scratch slack
    cap = min((vmem_cap * 7) // 8, 112 << 20)  # never the full VMEM on v7x
    vmem_limit = None if est <= (12 << 20) else int(min(max(est, 16 << 20), cap))

    kwargs = dict(tm=tm, tn=tn, n_real=n, n_pad=n_pad,
                  vmem_limit=vmem_limit, lane_out=lane_out)
    try:
        out = _invoke(emb_p, sq_anchor, lab_anchor, sq_cols, lab_cols,
                      single_buffer=True, **kwargs)
    except Exception:
        # Pallas versions without BlockSpec.pipeline_mode / pl.Buffered fall
        # back to default double-buffered resident operands (same numerics).
        out = _invoke(emb_p, sq_anchor, lab_anchor, sq_cols, lab_cols,
                      single_buffer=False, **kwargs)

    losses = out[0, :n] if lane_out else out[:n, 0]
    return jnp.sum(losses) / n


def _reference_loss(embeddings, labels):
    # Pure-JAX reference mirroring the PyTorch forward exactly.
    x = embeddings.astype(jnp.float32)
    dot = x @ x.T
    sq = jnp.sum(x * x, axis=-1)
    d2 = jnp.maximum(sq[None, :] - 2.0 * dot + sq[:, None], 0.0)
    zm = (d2 == 0.0).astype(jnp.float32)
    dist = jnp.sqrt(d2 + zm * 1e-16) * (1.0 - zm)
    n = labels.shape[0]
    eq = labels[None, :] == labels[:, None]
    eye = jnp.eye(n, dtype=bool)
    mask_ap = (eq & ~eye).astype(jnp.float32)
    mask_an = (~eq).astype(jnp.float32)
    hp = jnp.max(mask_ap * dist, axis=1, keepdims=True)
    mx = jnp.max(dist, axis=1, keepdims=True)
    hn = jnp.min(dist + mx * (1.0 - mask_an), axis=1, keepdims=True)
    return jnp.mean(jnp.log1p(jnp.exp(hp - hn)))


if __name__ == "__main__":
    key = jax.random.PRNGKey(0)
    k_emb, k_lab, k_emb2, k_lab2 = jax.random.split(key, 4)

    # Small case: single row block, single column chunk, no padding.
    batch, hidden = 8, 32
    embeddings = jax.random.normal(k_emb, (batch, hidden), dtype=jnp.float32)
    labels = jax.random.randint(k_lab, (batch,), 0, 3, dtype=jnp.int32)

    loss = batch_hard_soft_margin_triplet_loss(embeddings, labels)
    jax.block_until_ready(loss)
    ref = _reference_loss(embeddings, labels)
    assert jnp.allclose(loss, ref, atol=1e-5, rtol=1e-5), (loss, ref)

    # Larger case: 2 row blocks, 2 column chunks (fori_loop path), padded cols.
    batch2, hidden2 = 200, 64
    emb2 = jax.random.normal(k_emb2, (batch2, hidden2), dtype=jnp.float32)
    lab2 = jax.random.randint(k_lab2, (batch2,), 0, 5, dtype=jnp.int32)
    loss2 = batch_hard_soft_margin_triplet_loss(emb2, lab2,
                                                block_rows=128, block_cols=128)
    jax.block_until_ready(loss2)
    ref2 = _reference_loss(emb2, lab2)
    assert jnp.allclose(loss2, ref2, atol=1e-5, rtol=1e-5), (loss2, ref2)

    print("KERNEL_OK")
</pallas_src>

<mosaic_0001>
module attributes {stable_mosaic.version = 11 : i64} {
  func.func @_triplet_loss_kernel(%arg0: i32, %arg1: memref<8x32xf32, #tpu.memory_space<vmem>>, %arg2: memref<8x1xf32, #tpu.memory_space<vmem>>, %arg3: memref<8x1xi32, #tpu.memory_space<vmem>>, %arg4: memref<1x8xf32, #tpu.memory_space<vmem>>, %arg5: memref<1x8xi32, #tpu.memory_space<vmem>>, %arg6: memref<1x8xf32, #tpu.memory_space<vmem>>) attributes {dimension_semantics = [#tpu.dimension_semantics<parallel>], iteration_bounds = array<i64: 1>, scalar_prefetch = 0 : i64, scratch_operands = 0 : i64, tpu.core_type = #tpu.core_type<tc>, window_params = [{pipeline_mode = #tpu.pipeline_mode<synchronous>, transform_indices = @transform_0, window_bounds = array<i64: 8, 32>}, {transform_indices = @transform_1, window_bounds = array<i64: 8, 1>}, {transform_indices = @transform_2, window_bounds = array<i64: 8, 1>}, {pipeline_mode = #tpu.pipeline_mode<synchronous>, transform_indices = @transform_3, window_bounds = array<i64: 1, 8>}, {pipeline_mode = #tpu.pipeline_mode<synchronous>, transform_indices = @transform_4, window_bounds = array<i64: 1, 8>}, {transform_indices = @transform_5, window_bounds = array<i64: 1, 8>}]} {
    %c0 = arith.constant 0 : index
    %c0_0 = arith.constant 0 : index
    %0 = vector.load %arg1[%c0, %c0_0] : memref<8x32xf32, #tpu.memory_space<vmem>>, vector<8x32xf32>
    %c0_1 = arith.constant 0 : index
    %c0_2 = arith.constant 0 : index
    %1 = vector.load %arg2[%c0_1, %c0_2] : memref<8x1xf32, #tpu.memory_space<vmem>>, vector<8x1xf32>
    %c0_3 = arith.constant 0 : index
    %c0_4 = arith.constant 0 : index
    %2 = vector.load %arg3[%c0_3, %c0_4] : memref<8x1xi32, #tpu.memory_space<vmem>>, vector<8x1xi32>
    %3 = tpu.iota {dimensions = array<i32: 0>} : vector<8x8xi32>
    %c8_i32 = arith.constant 8 : i32
    %4 = arith.muli %arg0, %c8_i32 : i32
    %5 = vector.broadcast %4 : i32 to vector<8x8xi32>
    %6 = arith.addi %3, %5 : vector<8x8xi32>
    %7 = tpu.iota {dimensions = array<i32: 1>} : vector<8x8xi32>
    %cst = arith.constant 0.000000e+00 : f32
    %8 = vector.broadcast %cst : f32 to vector<8x1xf32>
    %cst_5 = arith.constant 1.000000e+30 : f32
    %9 = vector.broadcast %cst_5 : f32 to vector<8x1xf32>
    %cst_6 = arith.constant 0.000000e+00 : f32
    %10 = vector.broadcast %cst_6 : f32 to vector<8x1xf32>
    %c0_7 = arith.constant 0 : index
    %c0_8 = arith.constant 0 : index
    %11 = vector.load %arg1[%c0_7, %c0_8] : memref<8x32xf32, #tpu.memory_space<vmem>>, vector<8x32xf32>
    %cst_9 = arith.constant dense<0.000000e+00> : vector<8x8xf32>
    %12 = tpu.matmul %0, %11, %cst_9 {dimension_numbers = #tpu.dot_dimension_numbers<[1], [1], [0], [0], [0, 0, 1, 0], [], []>} : vector<8x32xf32>, vector<8x32xf32>, vector<8x8xf32> -> vector<8x8xf32>
    %c0_10 = arith.constant 0 : index
    %c0_11 = arith.constant 0 : index
    %13 = vector.load %arg4[%c0_10, %c0_11] : memref<1x8xf32, #tpu.memory_space<vmem>>, vector<1x8xf32>
    %14 = vector.shape_cast %13 : vector<1x8xf32> to vector<8xf32>
    %15 = vector.shape_cast %14 : vector<8xf32> to vector<1x8xf32>
    %c0_12 = arith.constant 0 : index
    %c0_13 = arith.constant 0 : index
    %16 = vector.load %arg5[%c0_12, %c0_13] : memref<1x8xi32, #tpu.memory_space<vmem>>, vector<1x8xi32>
    %17 = vector.shape_cast %16 : vector<1x8xi32> to vector<8xi32>
    %18 = vector.shape_cast %17 : vector<8xi32> to vector<1x8xi32>
    %cst_14 = arith.constant 2.000000e+00 : f32
    %19 = vector.broadcast %cst_14 : f32 to vector<8x8xf32>
    %20 = arith.mulf %19, %12 : vector<8x8xf32>
    %21 = vector.broadcast %1 : vector<8x1xf32> to vector<8x8xf32>
    %22 = arith.subf %21, %20 : vector<8x8xf32>
    %23 = vector.broadcast %15 : vector<1x8xf32> to vector<8x8xf32>
    %24 = arith.addf %22, %23 : vector<8x8xf32>
    %cst_15 = arith.constant 0.000000e+00 : f32
    %25 = vector.broadcast %cst_15 : f32 to vector<8x8xf32>
    %26 = arith.maximumf %24, %25 : vector<8x8xf32>
    %c0_i32 = arith.constant 0 : i32
    %27 = vector.broadcast %c0_i32 : i32 to vector<8x8xi32>
    %28 = arith.addi %7, %27 : vector<8x8xi32>
    %29 = vector.broadcast %2 : vector<8x1xi32> to vector<8x8xi32>
    %30 = vector.broadcast %18 : vector<1x8xi32> to vector<8x8xi32>
    %31 = arith.cmpi eq, %29, %30 : vector<8x8xi32>
    %32 = arith.cmpi ne, %6, %28 : vector<8x8xi32>
    %33 = arith.andi %31, %32 : vector<8x8xi1>
    %cst_16 = arith.constant 0.000000e+00 : f32
    %34 = vector.broadcast %cst_16 : f32 to vector<8x8xf32>
    %35 = arith.select %33, %26, %34 : vector<8x8xi1>, vector<8x8xf32>
    %cst_17 = arith.constant dense<0xFF800000> : vector<8xf32>
    %36 = vector.multi_reduction <maximumf>, %35, %cst_17 [1] : vector<8x8xf32> to vector<8xf32>
    %37 = vector.shape_cast %36 : vector<8xf32> to vector<8x1xf32>
    %38 = arith.maximumf %8, %37 : vector<8x1xf32>
    %cst_18 = arith.constant 1.000000e+30 : f32
    %39 = vector.broadcast %cst_18 : f32 to vector<8x8xf32>
    %40 = arith.select %31, %39, %26 : vector<8x8xi1>, vector<8x8xf32>
    %cst_19 = arith.constant dense<0x7F800000> : vector<8xf32>
    %41 = vector.multi_reduction <minimumf>, %40, %cst_19 [1] : vector<8x8xf32> to vector<8xf32>
    %42 = vector.shape_cast %41 : vector<8xf32> to vector<8x1xf32>
    %43 = arith.minimumf %9, %42 : vector<8x1xf32>
    %cst_20 = arith.constant dense<0xFF800000> : vector<8xf32>
    %44 = vector.multi_reduction <maximumf>, %26, %cst_20 [1] : vector<8x8xf32> to vector<8xf32>
    %45 = vector.shape_cast %44 : vector<8xf32> to vector<8x1xf32>
    %46 = arith.maximumf %10, %45 : vector<8x1xf32>
    %47 = math.sqrt %38 : vector<8x1xf32>
    %cst_21 = arith.constant 5.000000e+29 : f32
    %48 = vector.broadcast %cst_21 : f32 to vector<8x1xf32>
    %49 = arith.cmpf olt, %43, %48 : vector<8x1xf32>
    %50 = arith.select %49, %43, %46 : vector<8x1xi1>, vector<8x1xf32>
    %51 = math.sqrt %50 : vector<8x1xf32>
    %52 = arith.subf %47, %51 : vector<8x1xf32>
    %cst_22 = arith.constant 0.000000e+00 : f32
    %53 = vector.broadcast %cst_22 : f32 to vector<8x1xf32>
    %54 = arith.maximumf %52, %53 : vector<8x1xf32>
    %55 = math.absf %52 : vector<8x1xf32>
    %cst_23 = arith.constant 0.000000e+00 : f32
    %56 = vector.broadcast %cst_23 : f32 to vector<8x1xf32>
    %57 = arith.subf %56, %55 : vector<8x1xf32>
    %58 = math.exp %57 : vector<8x1xf32>
    %59 = math.log1p %58 : vector<8x1xf32>
    %60 = arith.addf %54, %59 : vector<8x1xf32>
    %61 = tpu.transpose %60, [1, 0] : vector<8x1xf32> -> vector<1x8xf32>
    %c0_24 = arith.constant 0 : index
    %c0_25 = arith.constant 0 : index
    %62 = vector.load %arg6[%c0_24, %c0_25] : memref<1x8xf32, #tpu.memory_space<vmem>>, vector<1x8xf32>
    tpu.vector_store %arg6[%c0_24, %c0_25], %61 {strides = array<i32>} : memref<1x8xf32, #tpu.memory_space<vmem>>, vector<1x8xf32>,
    return
  }
  func.func @transform_0(%arg0: i32) -> (i32, i32) {
    %c0_i32 = arith.constant 0 : i32
    %c0_i32_0 = arith.constant 0 : i32
    %c0_i32_1 = arith.constant 0 : i32
    return %c0_i32, %c0_i32_0 : i32, i32
  }
  func.func @transform_1(%arg0: i32) -> (i32, i32) {
    %c0_i32 = arith.constant 0 : i32
    %c0_i32_0 = arith.constant 0 : i32
    return %arg0, %c0_i32 : i32, i32
  }
  func.func @transform_2(%arg0: i32) -> (i32, i32) {
    %c0_i32 = arith.constant 0 : i32
    %c0_i32_0 = arith.constant 0 : i32
    return %arg0, %c0_i32 : i32, i32
  }
  func.func @transform_3(%arg0: i32) -> (i32, i32) {
    %c0_i32 = arith.constant 0 : i32
    %c0_i32_0 = arith.constant 0 : i32
    %c0_i32_1 = arith.constant 0 : i32
    return %c0_i32, %c0_i32_0 : i32, i32
  }
  func.func @transform_4(%arg0: i32) -> (i32, i32) {
    %c0_i32 = arith.constant 0 : i32
    %c0_i32_0 = arith.constant 0 : i32
    %c0_i32_1 = arith.constant 0 : i32
    return %c0_i32, %c0_i32_0 : i32, i32
  }
  func.func @transform_5(%arg0: i32) -> (i32, i32) {
    %c0_i32 = arith.constant 0 : i32
    %c0_i32_0 = arith.constant 0 : i32
    return %c0_i32, %arg0 : i32, i32
  }
}

module attributes {stable_mosaic.version = 11 : i64} {
  func.func @_triplet_loss_kernel(%arg0: i32, %arg1: memref<8x32xf32, #tpu.memory_space<vmem>>, %arg2: memref<8x1xf32, #tpu.memory_space<vmem>>, %arg3: memref<8x1xi32, #tpu.memory_space<vmem>>, %arg4: memref<1x8xf32, #tpu.memory_space<vmem>>, %arg5: memref<1x8xi32, #tpu.memory_space<vmem>>, %arg6: memref<1x8xf32, #tpu.memory_space<vmem>>) attributes {dimension_semantics = [#tpu.dimension_semantics<parallel>], iteration_bounds = array<i64: 1>, scalar_prefetch = 0 : i64, scratch_operands = 0 : i64, tpu.core_type = #tpu.core_type<tc>, window_params = [{pipeline_mode = #tpu.pipeline_mode<synchronous>, transform_indices = @transform_0, window_bounds = array<i64: 8, 32>}, {transform_indices = @transform_1, window_bounds = array<i64: 8, 1>}, {transform_indices = @transform_2, window_bounds = array<i64: 8, 1>}, {pipeline_mode = #tpu.pipeline_mode<synchronous>, transform_indices = @transform_3, window_bounds = array<i64: 1, 8>}, {pipeline_mode = #tpu.pipeline_mode<synchronous>, transform_indices = @transform_4, window_bounds = array<i64: 1, 8>}, {transform_indices = @transform_5, window_bounds = array<i64: 1, 8>}]} {
    %c0 = arith.constant 0 : index
    %c0_0 = arith.constant 0 : index
    %0 = vector.load %arg1[%c0, %c0_0] : memref<8x32xf32, #tpu.memory_space<vmem>>, vector<8x32xf32>
    %c0_1 = arith.constant 0 : index
    %c0_2 = arith.constant 0 : index
    %1 = vector.load %arg2[%c0_1, %c0_2] : memref<8x1xf32, #tpu.memory_space<vmem>>, vector<8x1xf32>
    %c0_3 = arith.constant 0 : index
    %c0_4 = arith.constant 0 : index
    %2 = vector.load %arg3[%c0_3, %c0_4] : memref<8x1xi32, #tpu.memory_space<vmem>>, vector<8x1xi32>
    %3 = tpu.iota {dimensions = array<i32: 0>} : vector<8x8xi32>
    %c8_i32 = arith.constant 8 : i32
    %4 = arith.muli %arg0, %c8_i32 : i32
    %5 = vector.broadcast %4 : i32 to vector<8x8xi32>
    %6 = arith.addi %3, %5 : vector<8x8xi32>
    %7 = tpu.iota {dimensions = array<i32: 1>} : vector<8x8xi32>
    %cst = arith.constant 0.000000e+00 : f32
    %8 = vector.broadcast %cst : f32 to vector<8x1xf32>
    %cst_5 = arith.constant 1.000000e+30 : f32
    %9 = vector.broadcast %cst_5 : f32 to vector<8x1xf32>
    %cst_6 = arith.constant 0.000000e+00 : f32
    %10 = vector.broadcast %cst_6 : f32 to vector<8x1xf32>
    %c0_7 = arith.constant 0 : index
    %c0_8 = arith.constant 0 : index
    %11 = vector.load %arg1[%c0_7, %c0_8] : memref<8x32xf32, #tpu.memory_space<vmem>>, vector<8x32xf32>
    %cst_9 = arith.constant dense<0.000000e+00> : vector<8x8xf32>
    %12 = tpu.matmul %0, %11, %cst_9 {dimension_numbers = #tpu.dot_dimension_numbers<[1], [1], [0], [0], [0, 0, 1, 0], [], []>} : vector<8x32xf32>, vector<8x32xf32>, vector<8x8xf32> -> vector<8x8xf32>
    %c0_10 = arith.constant 0 : index
    %c0_11 = arith.constant 0 : index
    %13 = vector.load %arg4[%c0_10, %c0_11] : memref<1x8xf32, #tpu.memory_space<vmem>>, vector<1x8xf32>
    %14 = vector.shape_cast %13 : vector<1x8xf32> to vector<8xf32>
    %15 = vector.shape_cast %14 : vector<8xf32> to vector<1x8xf32>
    %c0_12 = arith.constant 0 : index
    %c0_13 = arith.constant 0 : index
    %16 = vector.load %arg5[%c0_12, %c0_13] : memref<1x8xi32, #tpu.memory_space<vmem>>, vector<1x8xi32>
    %17 = vector.shape_cast %16 : vector<1x8xi32> to vector<8xi32>
    %18 = vector.shape_cast %17 : vector<8xi32> to vector<1x8xi32>
    %cst_14 = arith.constant 2.000000e+00 : f32
    %19 = vector.broadcast %cst_14 : f32 to vector<8x8xf32>
    %20 = arith.mulf %19, %12 : vector<8x8xf32>
    %21 = vector.broadcast %1 : vector<8x1xf32> to vector<8x8xf32>
    %22 = arith.subf %21, %20 : vector<8x8xf32>
    %23 = vector.broadcast %15 : vector<1x8xf32> to vector<8x8xf32>
    %24 = arith.addf %22, %23 : vector<8x8xf32>
    %cst_15 = arith.constant 0.000000e+00 : f32
    %25 = vector.broadcast %cst_15 : f32 to vector<8x8xf32>
    %26 = arith.maximumf %24, %25 : vector<8x8xf32>
    %c0_i32 = arith.constant 0 : i32
    %27 = vector.broadcast %c0_i32 : i32 to vector<8x8xi32>
    %28 = arith.addi %7, %27 : vector<8x8xi32>
    %29 = vector.broadcast %2 : vector<8x1xi32> to vector<8x8xi32>
    %30 = vector.broadcast %18 : vector<1x8xi32> to vector<8x8xi32>
    %31 = arith.cmpi eq, %29, %30 : vector<8x8xi32>
    %32 = arith.cmpi ne, %6, %28 : vector<8x8xi32>
    %33 = arith.andi %31, %32 : vector<8x8xi1>
    %cst_16 = arith.constant 0.000000e+00 : f32
    %34 = vector.broadcast %cst_16 : f32 to vector<8x8xf32>
    %35 = arith.select %33, %26, %34 : vector<8x8xi1>, vector<8x8xf32>
    %cst_17 = arith.constant dense<0xFF800000> : vector<8xf32>
    %36 = vector.multi_reduction <maximumf>, %35, %cst_17 [1] : vector<8x8xf32> to vector<8xf32>
    %37 = vector.shape_cast %36 : vector<8xf32> to vector<8x1xf32>
    %38 = arith.maximumf %8, %37 : vector<8x1xf32>
    %cst_18 = arith.constant 1.000000e+30 : f32
    %39 = vector.broadcast %cst_18 : f32 to vector<8x8xf32>
    %40 = arith.select %31, %39, %26 : vector<8x8xi1>, vector<8x8xf32>
    %cst_19 = arith.constant dense<0x7F800000> : vector<8xf32>
    %41 = vector.multi_reduction <minimumf>, %40, %cst_19 [1] : vector<8x8xf32> to vector<8xf32>
    %42 = vector.shape_cast %41 : vector<8xf32> to vector<8x1xf32>
    %43 = arith.minimumf %9, %42 : vector<8x1xf32>
    %cst_20 = arith.constant dense<0xFF800000> : vector<8xf32>
    %44 = vector.multi_reduction <maximumf>, %26, %cst_20 [1] : vector<8x8xf32> to vector<8xf32>
    %45 = vector.shape_cast %44 : vector<8xf32> to vector<8x1xf32>
    %46 = arith.maximumf %10, %45 : vector<8x1xf32>
    %47 = math.sqrt %38 : vector<8x1xf32>
    %cst_21 = arith.constant 5.000000e+29 : f32
    %48 = vector.broadcast %cst_21 : f32 to vector<8x1xf32>
    %49 = arith.cmpf olt, %43, %48 : vector<8x1xf32>
    %50 = arith.select %49, %43, %46 : vector<8x1xi1>, vector<8x1xf32>
    %51 = math.sqrt %50 : vector<8x1xf32>
    %52 = arith.subf %47, %51 : vector<8x1xf32>
    %cst_22 = arith.constant 0.000000e+00 : f32
    %53 = vector.broadcast %cst_22 : f32 to vector<8x1xf32>
    %54 = arith.maximumf %52, %53 : vector<8x1xf32>
    %55 = math.absf %52 : vector<8x1xf32>
    %cst_23 = arith.constant 0.000000e+00 : f32
    %56 = vector.broadcast %cst_23 : f32 to vector<8x1xf32>
    %57 = arith.subf %56, %55 : vector<8x1xf32>
    %58 = math.exp %57 : vector<8x1xf32>
    %59 = math.log1p %58 : vector<8x1xf32>
    %60 = arith.addf %54, %59 : vector<8x1xf32>
    %61 = tpu.transpose %60, [1, 0] : vector<8x1xf32> -> vector<1x8xf32>
    %c0_24 = arith.constant 0 : index
    %c0_25 = arith.constant 0 : index
    %62 = vector.load %arg6[%c0_24, %c0_25] : memref<1x8xf32, #tpu.memory_space<vmem>>, vector<1x8xf32>
    tpu.vector_store %arg6[%c0_24, %c0_25], %61 {strides = array<i32>} : memref<1x8xf32, #tpu.memory_space<vmem>>, vector<1x8xf32>,
    return
  }
  func.func @transform_0(%arg0: i32) -> (i32, i32) {
    %c0_i32 = arith.constant 0 : i32
    %c0_i32_0 = arith.constant 0 : i32
    %c0_i32_1 = arith.constant 0 : i32
    return %c0_i32, %c0_i32_0 : i32, i32
  }
  func.func @transform_1(%arg0: i32) -> (i32, i32) {
    %c0_i32 = arith.constant 0 : i32
    %c0_i32_0 = arith.constant 0 : i32
    return %arg0, %c0_i32 : i32, i32
  }
  func.func @transform_2(%arg0: i32) -> (i32, i32) {
    %c0_i32 = arith.constant 0 : i32
    %c0_i32_0 = arith.constant 0 : i32
    return %arg0, %c0_i32 : i32, i32
  }
  func.func @transform_3(%arg0: i32) -> (i32, i32) {
    %c0_i32 = arith.constant 0 : i32
    %c0_i32_0 = arith.constant 0 : i32
    %c0_i32_1 = arith.constant 0 : i32
    return %c0_i32, %c0_i32_0 : i32, i32
  }
  func.func @transform_4(%arg0: i32) -> (i32, i32) {
    %c0_i32 = arith.constant 0 : i32
    %c0_i32_0 = arith.constant 0 : i32
    %c0_i32_1 = arith.constant 0 : i32
    return %c0_i32, %c0_i32_0 : i32, i32
  }
  func.func @transform_5(%arg0: i32) -> (i32, i32) {
    %c0_i32 = arith.constant 0 : i32
    %c0_i32_0 = arith.constant 0 : i32
    return %c0_i32, %arg0 : i32, i32
  }
}

</mosaic_0001>

<bundles_post_ra>
// kernel: tpu_custom_call.1
= control target key start
LH: loop header
LB: loop body
LE: loop exit
PB: predicated region body
PF: predicated region fallthrough
CT: control target
= control target key end

     0   :  { %vm31_vm0 = vcmask 261120   ;;  %v275_v2 = vmov 0.0   ;;  %vm276_vm1 = vmmov 0   ;;  %s336_s0 = inlined_call_operand.vmem [shape: f32[8,32], index: 0, kind: input, shape index: {}]   ;;  %s337_s1 = inlined_call_operand.vmem [shape: f32[8,1], index: 1, kind: input, shape index: {}]   ;;  %s338_s2 = inlined_call_operand.vmem [shape: s32[8,1], index: 2, kind: input, shape index: {}]   ;;  %s339_s3 = inlined_call_operand.vmem [shape: f32[1,8], index: 3, kind: input, shape index: {}]   ;;  %s340_s4 = inlined_call_operand.vmem [shape: s32[1,8], index: 4, kind: input, shape index: {}]   ;;  %s341_s5 = inlined_call_operand.hbm [shape: f32[1,8], index: 5, kind: output, shape index: {}]  }
   0x1   :  { %v21_v0 = vld [vmem:[%s336_s0] sm:$0xff]  ;;  %233 = vmatprep.subr.mxu0 %v275_v2  ;;  %235 = vmatprep.mubr.msk.f32.mxu0 %vm276_vm1, %v275_v2 }
   0x2   :  { %v22_v1 = vld [vmem:[%s337_s1] sm:$0xff] }
   0x3   :  { %10 = vsyncpa [#allocation3], 0  ;;  %234 = vmatpush3.xpose.msk.msra.mxu0 %vm31_vm0, %v21_v0  ;;  %v277_v3 = vmov 0   ;;  %v23_v4 = vld [vmem:[%s338_s2] sm:$0xff]  ;;  %v24_v6 = vlaneseq  ;;  %vm133_vm4 = vcmask 64512   ;;  %s278_s2 = smov [#allocation2]  }
   0x4   :  { %242 = vset.pattern.permute.xlu0 %v277_v3  ;;  %v229_v12 = vld [vmem:[%s339_s3] ss:$0 sm:$0xff]  ;;  %s219_s3 = sshll.u32 %s278_s2, 4  ;;  %vm211_vm12 = vcmask 57344   ;;  %s220_s3 = int_to_ptr.vmem [resolvable:$true] %s219_s3 }
   0x5   :  { %110 = vperm.xlu0 %242, %v22_v1   ;;  %v25_v10 = vshrl.u32 %v24_v6, 7  ;;  %v30_v11 = vand.u32 127, %v24_v6  ;;  %v230_v13 = vld [vmem:[%s340_s4] ss:$0 sm:$0xff]  ;;  %s251_s4 = scalar_lea.vmem %s220_s3, 16  ;;  %s255_s26 = scalar_lea.vmem %s220_s3, 32 }
   0x6   :  { %236 = vmatmul.mubr.msk.f32.vlgmr.msra.gmra.mrb[0].mxu0 %vm31_vm0, %v21_v0  ;;  %p252_p0 = scmp.ne.s32.totalorder %s220_s3, %s251_s4  ;;  %p256_p1 = scmp.lt.s32.totalorder %s220_s3, %s220_s3 }
   0x7   :  { %vm130_vm2 = vcmp.ne.s32.totalorder %v25_v10, %v30_v11  ;;  %p257_p2 = scmp.lt.s32.totalorder %s255_s26, %s251_s4 }
   0x9   :  { %123 = vperm.xlu0 %242, %v23_v4   ;;  %p258_p3 = por %p257_p2, %p256_p1 }
   0xb   :  { %p259_p4 = pnand %p258_p3, %p252_p0 }
  0x84   :  { %v111_v5 = vpop.permute.xlu0 %110 }
  0x88   :  { %v124_v14 = vpop.permute.xlu0 %123 }
  0x89   :  { %vm129_vm3 = vcmp.eq.s32.totalorder %v124_v14, %v230_v13 }
  0x8a   :  { %vm131_vm5 = vmand %vm129_vm3, %vm130_vm2 }
  0xd9   :  { %v101_v7 = vpop.f32.mrb[0].mxu0 }
  0xda   :  { %v107_v8 = vmul.f32 2.0, %v101_v7  ;;  %v237_v9 = vpop.f32.mrb[1].mxu0 }
  0xdc   :  { %v113_v15 = vsub.f32 %v111_v5, %v107_v8 }
  0xde   :  { %v120_v16 = vadd.f32 %v229_v12, %v113_v15 }
  0xe0   :  { %v121_v17 = vmax.f32 %v120_v16, 0.0 }
  0xe2   :  { %v138_v18 = vsel %vm129_vm3, 1e+30, %v121_v17  ;;  %v132_v19 = vsel %vm131_vm5, %v121_v17, 0.0  ;;  %v143_v22 = vsel %vm133_vm4, %v121_v17, -inf }
  0xe3   :  { %v139_v20 = vsel %vm133_vm4, %v138_v18, inf  ;;  %v134_v21 = vsel %vm133_vm4, %v132_v19, -inf }
  0xe4   :  { %140 = vmin.xlane.f32.xlu1 %v139_v20  ;;  %135 = vmax.xlane.f32.xlu0 %v134_v21 }
  0xe8   :  { %144 = vmax.xlane.f32.xlu1 %v143_v22 }
 0x171   :  { %v141_v23 = vpop.xlane.xlu1 %140  ;;  %v136_v24 = vpop.xlane.xlu0 %135 }
 0x172   :  { %v137_v25 = vmax.f32 %v136_v24, 0.0  ;;  %v142_v26 = vmin.f32 %v141_v23, 1e+30 }
 0x174   :  { %243 = vrsqrt.f32 %v137_v25  ;;  %vm154_vm6 = vcmp.lt.f32.partialorder %v142_v26, 5e+29  ;;  %vm149_vm7 = vcmp.eq.f32.partialorder %v137_v25, inf  ;;  %v152_v35 = vand.u32 2147483648, %v137_v25 }
 0x175   :  { %v145_v27 = vpop.xlane.xlu1 %144  ;;  %vm151_vm9 = vcmp.eq.f32.partialorder %v137_v25, 0.0 }
 0x176   :  { %v146_v28 = vmax.f32 %v145_v27, 0.0 }
 0x178   :  { %v155_v29 = vsel %vm154_vm6, %v142_v26, %v146_v28 }
 0x179   :  { %245 = vrsqrt.f32 %v155_v29  ;;  %vm158_vm8 = vcmp.eq.f32.partialorder %v155_v29, inf  ;;  %v161_v36 = vand.u32 2147483648, %v155_v29  ;;  %vm160_vm10 = vcmp.eq.f32.partialorder %v155_v29, 0.0 }
 0x17e   :  { %v244_v30 = vpop.eup %243 }
 0x17f   :  { %v148_v31 = vmul.f32 %v244_v30, %v137_v25 }
 0x181   :  { %v150_v33 = vsel %vm149_vm7, %v137_v25, %v148_v31 }
 0x182   :  { %v153_v38 = vsel %vm151_vm9, %v152_v35, %v150_v33 }
 0x183   :  { %v246_v32 = vpop.eup %245 }
 0x184   :  { %v157_v34 = vmul.f32 %v246_v32, %v155_v29 }
 0x186   :  { %v159_v37 = vsel %vm158_vm8, %v155_v29, %v157_v34 }
 0x187   :  { %v162_v39 = vsel %vm160_vm10, %v161_v36, %v159_v37 }
 0x188   :  { %v163_v40 = vsub.f32 %v153_v38, %v162_v39 }
 0x18a   :  { %v165_v41 = vand.u32 2147483647, %v163_v40  ;;  %v164_v52 = vmax.f32 %v163_v40, 0.0 }
 0x18c   :  { %v166_v42 = vsub.f32 0.0, %v165_v41 }
 0x18e   :  { %v167_v43 = vmul.f32 1.442695, %v166_v42 }
 0x190   :  { %247 = vpow2.f32 %v167_v43 }
 0x19a   :  { %v248_v44 = vpop.eup %247 }
 0x19b   :  { %v169_v45 = vadd.f32 1.0, %v248_v44  ;;  %v172_v46 = vmul.f32 -0.5, %v248_v44  ;;  %v175_v48 = vand.u32 2147483647, %v248_v44 }
 0x19d   :  { %249 = vlog2.f32 %v169_v45  ;;  %v173_v47 = vadd.f32 1.0, %v172_v46  ;;  %vm176_vm11 = vcmp.lt.f32.partialorder %v175_v48, 0.0004427343 }
 0x19f   :  { %v174_v51 = vmul.f32 %v248_v44, %v173_v47 }
 0x1a7   :  { %v250_v49 = vpop.eup %249 }
 0x1a8   :  { %v171_v50 = vmul.f32 0.6931472, %v250_v49 }
 0x1aa   :  { %v177_v53 = vsel %vm176_vm11, %v174_v51, %v171_v50 }
 0x1ab   :  { %v178_v54 = vadd.f32 %v177_v53, %v164_v52 }
 0x1ad   :  { %179 = vxpose.xlu1.b32.start.end [1/1] (short) (narrow) %v178_v54, 8 }
 0x22d   :  { %v195_v55 = vpop.trf.xlu1 }
 0x22e   :  { %212 = vst.msk [vmem:[#allocation2] sm:$0x1] %vm211_vm12, %v195_v55 }
 0x22f   :  { %262 = shalt.err (!%p259_p4)
}
 0x230   :  { %s263_s29 = scalar_lea.hbm %s341_s5, 16 }
 0x231   :  { %p264_p5 = scmp.ne.s32.totalorder %s341_s5, %s263_s29  ;;  %p267_p6 = scmp.lt.u32.totalorder %s263_s29, %s341_s5 }
 0x233   :  { %p269_p7 = pnand %p267_p6, %p264_p5 }
 0x235   :  { %272 = shalt.err (!%p269_p7)
}
 0x236   :  { %222 = dma.vmem_to_hbm [thread:$0]  %s220_s3, 16, %s341_s5, [#allocation3]  }
 0x237   :  { %273 = dma.done.wait [#allocation3], 16  }
 0x238   :  { %274 = vsyncadd [#allocation3], 4294967280 }
 0x239   :  { %226 = vsyncpa [#allocation3], 1 }

// kernel: tpu_custom_call.1
= control target key start
LH: loop header
LB: loop body
LE: loop exit
PB: predicated region body
PF: predicated region fallthrough
CT: control target
= control target key end

     0   :  { %vm31_vm0 = vcmask 261120   ;;  %v275_v2 = vmov 0.0   ;;  %vm276_vm1 = vmmov 0   ;;  %s336_s0 = inlined_call_operand.vmem [shape: f32[8,32], index: 0, kind: input, shape index: {}]   ;;  %s337_s1 = inlined_call_operand.vmem [shape: f32[8,1], index: 1, kind: input, shape index: {}]   ;;  %s338_s2 = inlined_call_operand.vmem [shape: s32[8,1], index: 2, kind: input, shape index: {}]   ;;  %s339_s3 = inlined_call_operand.vmem [shape: f32[1,8], index: 3, kind: input, shape index: {}]   ;;  %s340_s4 = inlined_call_operand.vmem [shape: s32[1,8], index: 4, kind: input, shape index: {}]   ;;  %s341_s5 = inlined_call_operand.hbm [shape: f32[1,8], index: 5, kind: output, shape index: {}]  }
   0x1   :  { %v21_v0 = vld [vmem:[%s336_s0] sm:$0xff]  ;;  %233 = vmatprep.subr.mxu0 %v275_v2  ;;  %235 = vmatprep.mubr.msk.f32.mxu0 %vm276_vm1, %v275_v2 }
   0x2   :  { %v22_v1 = vld [vmem:[%s337_s1] sm:$0xff] }
   0x3   :  { %10 = vsyncpa [#allocation3], 0  ;;  %234 = vmatpush3.xpose.msk.msra.mxu0 %vm31_vm0, %v21_v0  ;;  %v277_v3 = vmov 0   ;;  %v23_v4 = vld [vmem:[%s338_s2] sm:$0xff]  ;;  %v24_v6 = vlaneseq  ;;  %vm133_vm4 = vcmask 64512   ;;  %s278_s2 = smov [#allocation2]  }
   0x4   :  { %242 = vset.pattern.permute.xlu0 %v277_v3  ;;  %v229_v12 = vld [vmem:[%s339_s3] ss:$0 sm:$0xff]  ;;  %s219_s3 = sshll.u32 %s278_s2, 4  ;;  %vm211_vm12 = vcmask 57344   ;;  %s220_s3 = int_to_ptr.vmem [resolvable:$true] %s219_s3 }
   0x5   :  { %110 = vperm.xlu0 %242, %v22_v1   ;;  %v25_v10 = vshrl.u32 %v24_v6, 7  ;;  %v30_v11 = vand.u32 127, %v24_v6  ;;  %v230_v13 = vld [vmem:[%s340_s4] ss:$0 sm:$0xff]  ;;  %s251_s4 = scalar_lea.vmem %s220_s3, 16  ;;  %s255_s26 = scalar_lea.vmem %s220_s3, 32 }
   0x6   :  { %236 = vmatmul.mubr.msk.f32.vlgmr.msra.gmra.mrb[0].mxu0 %vm31_vm0, %v21_v0  ;;  %p252_p0 = scmp.ne.s32.totalorder %s220_s3, %s251_s4  ;;  %p256_p1 = scmp.lt.s32.totalorder %s220_s3, %s220_s3 }
   0x7   :  { %vm130_vm2 = vcmp.ne.s32.totalorder %v25_v10, %v30_v11  ;;  %p257_p2 = scmp.lt.s32.totalorder %s255_s26, %s251_s4 }
   0x9   :  { %123 = vperm.xlu0 %242, %v23_v4   ;;  %p258_p3 = por %p257_p2, %p256_p1 }
   0xb   :  { %p259_p4 = pnand %p258_p3, %p252_p0 }
  0x84   :  { %v111_v5 = vpop.permute.xlu0 %110 }
  0x88   :  { %v124_v14 = vpop.permute.xlu0 %123 }
  0x89   :  { %vm129_vm3 = vcmp.eq.s32.totalorder %v124_v14, %v230_v13 }
  0x8a   :  { %vm131_vm5 = vmand %vm129_vm3, %vm130_vm2 }
  0xd9   :  { %v101_v7 = vpop.f32.mrb[0].mxu0 }
  0xda   :  { %v107_v8 = vmul.f32 2.0, %v101_v7  ;;  %v237_v9 = vpop.f32.mrb[1].mxu0 }
  0xdc   :  { %v113_v15 = vsub.f32 %v111_v5, %v107_v8 }
  0xde   :  { %v120_v16 = vadd.f32 %v229_v12, %v113_v15 }
  0xe0   :  { %v121_v17 = vmax.f32 %v120_v16, 0.0 }
  0xe2   :  { %v138_v18 = vsel %vm129_vm3, 1e+30, %v121_v17  ;;  %v132_v19 = vsel %vm131_vm5, %v121_v17, 0.0  ;;  %v143_v22 = vsel %vm133_vm4, %v121_v17, -inf }
  0xe3   :  { %v139_v20 = vsel %vm133_vm4, %v138_v18, inf  ;;  %v134_v21 = vsel %vm133_vm4, %v132_v19, -inf }
  0xe4   :  { %140 = vmin.xlane.f32.xlu1 %v139_v20  ;;  %135 = vmax.xlane.f32.xlu0 %v134_v21 }
  0xe8   :  { %144 = vmax.xlane.f32.xlu1 %v143_v22 }
 0x171   :  { %v141_v23 = vpop.xlane.xlu1 %140  ;;  %v136_v24 = vpop.xlane.xlu0 %135 }
 0x172   :  { %v137_v25 = vmax.f32 %v136_v24, 0.0  ;;  %v142_v26 = vmin.f32 %v141_v23, 1e+30 }
 0x174   :  { %243 = vrsqrt.f32 %v137_v25  ;;  %vm154_vm6 = vcmp.lt.f32.partialorder %v142_v26, 5e+29  ;;  %vm149_vm7 = vcmp.eq.f32.partialorder %v137_v25, inf  ;;  %v152_v35 = vand.u32 2147483648, %v137_v25 }
 0x175   :  { %v145_v27 = vpop.xlane.xlu1 %144  ;;  %vm151_vm9 = vcmp.eq.f32.partialorder %v137_v25, 0.0 }
 0x176   :  { %v146_v28 = vmax.f32 %v145_v27, 0.0 }
 0x178   :  { %v155_v29 = vsel %vm154_vm6, %v142_v26, %v146_v28 }
 0x179   :  { %245 = vrsqrt.f32 %v155_v29  ;;  %vm158_vm8 = vcmp.eq.f32.partialorder %v155_v29, inf  ;;  %v161_v36 = vand.u32 2147483648, %v155_v29  ;;  %vm160_vm10 = vcmp.eq.f32.partialorder %v155_v29, 0.0 }
 0x17e   :  { %v244_v30 = vpop.eup %243 }
 0x17f   :  { %v148_v31 = vmul.f32 %v244_v30, %v137_v25 }
 0x181   :  { %v150_v33 = vsel %vm149_vm7, %v137_v25, %v148_v31 }
 0x182   :  { %v153_v38 = vsel %vm151_vm9, %v152_v35, %v150_v33 }
 0x183   :  { %v246_v32 = vpop.eup %245 }
 0x184   :  { %v157_v34 = vmul.f32 %v246_v32, %v155_v29 }
 0x186   :  { %v159_v37 = vsel %vm158_vm8, %v155_v29, %v157_v34 }
 0x187   :  { %v162_v39 = vsel %vm160_vm10, %v161_v36, %v159_v37 }
 0x188   :  { %v163_v40 = vsub.f32 %v153_v38, %v162_v39 }
 0x18a   :  { %v165_v41 = vand.u32 2147483647, %v163_v40  ;;  %v164_v52 = vmax.f32 %v163_v40, 0.0 }
 0x18c   :  { %v166_v42 = vsub.f32 0.0, %v165_v41 }
 0x18e   :  { %v167_v43 = vmul.f32 1.442695, %v166_v42 }
 0x190   :  { %247 = vpow2.f32 %v167_v43 }
 0x19a   :  { %v248_v44 = vpop.eup %247 }
 0x19b   :  { %v169_v45 = vadd.f32 1.0, %v248_v44  ;;  %v172_v46 = vmul.f32 -0.5, %v248_v44  ;;  %v175_v48 = vand.u32 2147483647, %v248_v44 }
 0x19d   :  { %249 = vlog2.f32 %v169_v45  ;;  %v173_v47 = vadd.f32 1.0, %v172_v46  ;;  %vm176_vm11 = vcmp.lt.f32.partialorder %v175_v48, 0.0004427343 }
 0x19f   :  { %v174_v51 = vmul.f32 %v248_v44, %v173_v47 }
 0x1a7   :  { %v250_v49 = vpop.eup %249 }
 0x1a8   :  { %v171_v50 = vmul.f32 0.6931472, %v250_v49 }
 0x1aa   :  { %v177_v53 = vsel %vm176_vm11, %v174_v51, %v171_v50 }
 0x1ab   :  { %v178_v54 = vadd.f32 %v177_v53, %v164_v52 }
 0x1ad   :  { %179 = vxpose.xlu1.b32.start.end [1/1] (short) (narrow) %v178_v54, 8 }
 0x22d   :  { %v195_v55 = vpop.trf.xlu1 }
 0x22e   :  { %212 = vst.msk [vmem:[#allocation2] sm:$0x1] %vm211_vm12, %v195_v55 }
 0x22f   :  { %262 = shalt.err (!%p259_p4)
}
 0x230   :  { %s263_s29 = scalar_lea.hbm %s341_s5, 16 }
 0x231   :  { %p264_p5 = scmp.ne.s32.totalorder %s341_s5, %s263_s29  ;;  %p267_p6 = scmp.lt.u32.totalorder %s263_s29, %s341_s5 }
 0x233   :  { %p269_p7 = pnand %p267_p6, %p264_p5 }
 0x235   :  { %272 = shalt.err (!%p269_p7)
}
 0x236   :  { %222 = dma.vmem_to_hbm [thread:$0]  %s220_s3, 16, %s341_s5, [#allocation3]  }
 0x237   :  { %273 = dma.done.wait [#allocation3], 16  }
 0x238   :  { %274 = vsyncadd [#allocation3], 4294967280 }
 0x239   :  { %226 = vsyncpa [#allocation3], 1 }

</bundles_post_ra>
